<compile_context>
chip_gen: v6e
topology: v6e:2x2x1
jax: 0.10.0
libtpu: 0.0.40
codegen_flags: <defaults>
</compile_context>

<pallas_src>
import random

import jax
import jax.numpy as jnp
import numpy as np
from jax import lax
from jax.experimental import pallas as pl
from jax.experimental.pallas import tpu as pltpu


# --------------------------------------------------------------------------- #
# Tile-size helpers                                                            #
# --------------------------------------------------------------------------- #
def _round_up(x, m):
    return ((x + m - 1) // m) * m


def _vmem_capacity_bytes():
    """Physical VMEM of the local chip; used only to pick tile sizes."""
    try:
        return int(pltpu.get_tpu_info().vmem_capacity_bytes)
    except Exception:
        return 128 << 20  # v5e/v6e default; safe (modest) tile choices


def _parallel_tile(n, cap, align, min_steps=1):
    """Tile for a parallel (independent) axis: multiple of `align` or the full
    extent.  Tail padding is fine (writeback is masked).  `min_steps>1` splits
    the axis so megacore (v7x, 2 TCs) has >=2 grid steps to shard."""
    if n <= align:
        return n
    tile = min(cap, _round_up(n, align))
    if min_steps > 1:
        tile = min(tile, _round_up(-(-n // min_steps), align))
    if tile >= n:
        return n
    return max((tile // align) * align, align)


def _lane_contraction_tile(d, cap):
    """Tile for a lane-oriented contraction axis (last dim): must divide d
    exactly (tail padding would feed garbage into the accumulator) and be a
    multiple of 128, else fall back to the full extent."""
    if d <= cap:
        return d
    t = (cap // 128) * 128
    while t >= 128:
        if d % t == 0:
            return t
        t -= 128
    return d


def _sublane_contraction_tile(n, cap):
    """Same as above for a sublane-oriented contraction axis (second-to-last)."""
    if n <= cap:
        return n
    t = (cap // 8) * 8
    while t >= 8:
        if n % t == 0:
            return t
        t -= 8
    return n


def _vmem_limit(est_bytes, cap_bytes):
    return int(min(max(2 * est_bytes, 32 << 20), (cap_bytes * 9) // 10))


# --------------------------------------------------------------------------- #
# Kernel 1: pairwise squared-L2 distance matrix                                #
#   dst[i, j] = ||h_i||^2 - 2 * <h_i, h_j> + ||h_j||^2                         #
# Grid: (i, j, k) with k tiling the contraction (D) axis -> f32 accumulator.   #
# --------------------------------------------------------------------------- #
def _l2_dist_kernel(hi_ref, hj_ref, sqi_ref, sqj_ref, o_ref, acc_ref):
    k = pl.program_id(2)

    @pl.when(k == 0)
    def _():
        acc_ref[...] = jnp.zeros_like(acc_ref)

    # trans-B contraction straight on the MXU (no hj.T relayout); operands stay
    # in their native (or opt-in bf16) dtype, accumulation in f32.
    acc_ref[...] += lax.dot_general(
        hi_ref[...], hj_ref[...],
        dimension_numbers=(((1,), (1,)), ((), ())),
        preferred_element_type=jnp.float32,
    )

    @pl.when(k == pl.num_programs(2) - 1)
    def _():
        o_ref[...] = sqi_ref[...] - 2.0 * acc_ref[...] + sqj_ref[...]


def pairwise_l2_dist(h, *, tm=None, tn=None, tk=None, cross_dtype=None):
    N, D = h.shape

    # Norms computed once in the wrapper, always in f32 (v5e has no bf16 VPU path).
    hf = h.astype(jnp.float32)
    sq = jnp.sum(hf * hf, axis=-1)
    sq_row = sq.reshape(N, 1)
    sq_col = sq.reshape(1, N)

    # Opt-in low-precision cross term (distances only feed comparisons in the sampler).
    hc = h if cross_dtype is None else h.astype(cross_dtype)

    vmem_cap = _vmem_capacity_bytes()
    small_vmem = vmem_cap < (100 << 20)   # proxy for v7x (64 MiB/TC, 2 TCs)

    if tm is None:
        tm = _parallel_tile(N, 256 if small_vmem else 512, 8,
                            min_steps=2 if small_vmem else 1)
    if tn is None:
        tn = _parallel_tile(N, 256 if small_vmem else 512, 128)
    if tk is None:
        tk = _lane_contraction_tile(D, 512)

    itemsize = hc.dtype.itemsize
    est = (2 * (tm + tn) * tk * itemsize            # hi + hj tiles (double buffered)
           + 2 * tm * 128 * 4                       # (tm,1) norms, lane padded
           + 2 * 8 * _round_up(tn, 128) * 4         # (1,tn) norms, sublane padded
           + 3 * tm * tn * 4)                       # out (x2) + accumulator
    limit = _vmem_limit(est, vmem_cap)

    return pl.pallas_call(
        _l2_dist_kernel,
        out_shape=jax.ShapeDtypeStruct((N, N), jnp.float32),
        grid_spec=pltpu.PrefetchScalarGridSpec(
            num_scalar_prefetch=0,
            grid=(pl.cdiv(N, tm), pl.cdiv(N, tn), pl.cdiv(D, tk)),
            in_specs=[
                pl.BlockSpec((tm, tk), lambda i, j, k: (i, k)),    # row tile of h
                pl.BlockSpec((tn, tk), lambda i, j, k: (j, k)),    # column tile of h
                pl.BlockSpec((tm, 1), lambda i, j, k: (i, 0)),     # row norms
                pl.BlockSpec((1, tn), lambda i, j, k: (0, j)),     # column norms
            ],
            out_specs=pl.BlockSpec((tm, tn), lambda i, j, k: (i, j)),
            scratch_shapes=[pltpu.VMEM((tm, tn), jnp.float32)],
        ),
        compiler_params=pltpu.CompilerParams(
            dimension_semantics=("parallel", "parallel", "arbitrary"),
            vmem_limit_bytes=limit,
        ),
    )(hc, hc, sq_row, sq_col)


# --------------------------------------------------------------------------- #
# Kernel 2: blocked triplet gather.  idx is (A, 3) int32 [anchor, pos, neg].   #
# h is streamed in (tc, D) row tiles; each grid step selects its rows with a   #
# one-hot (tb, tc) matrix on the MXU and accumulates into a (tb, 3D) block,    #
# written with full-width stores.  The wrapper reshapes to (A, 3, D).          #
# --------------------------------------------------------------------------- #
def _triplet_gather_kernel(idx_ref, h_ref, o_ref, acc_ref):
    k = pl.program_id(1)
    tb = o_ref.shape[0]
    tc, d = h_ref.shape

    @pl.when(k == 0)
    def _():
        acc_ref[...] = jnp.zeros_like(acc_ref)

    h = h_ref[...]
    idx = idx_ref[...]                                           # (tb, 3) int32
    col_ids = k * tc + lax.broadcasted_iota(jnp.int32, (tb, tc), 1)

    # One-hot row selection on the MXU: each global row appears in exactly one
    # k block, so the accumulation over k reproduces the gathered row exactly
    # (single nonzero term per output element).  Tail padding on the anchor
    # axis only feeds output rows that are masked on writeback.
    for c in range(3):                                           # anchor / pos / neg
        onehot = (col_ids == idx[:, c:c + 1]).astype(h.dtype)    # (tb, tc)
        acc_ref[:, c * d:(c + 1) * d] += lax.dot_general(
            onehot, h,
            dimension_numbers=(((1,), (0,)), ((), ())),
            preferred_element_type=jnp.float32,
        )

    @pl.when(k == pl.num_programs(1) - 1)
    def _():
        o_ref[...] = acc_ref[...].astype(o_ref.dtype)


def triplet_gather(h, idx, *, tb=None, tc=None):
    N, D = h.shape
    assert idx.ndim == 2 and idx.shape[1] == 3
    A = idx.shape[0]

    vmem_cap = _vmem_capacity_bytes()
    small_vmem = vmem_cap < (100 << 20)

    if tb is None:
        tb = _parallel_tile(A, 128, 8, min_steps=2 if small_vmem else 1)
    if tc is None:
        tc = _sublane_contraction_tile(N, 512)

    est = (2 * tb * 128 * 4                                        # idx tiles
           + 2 * tc * _round_up(D, 128) * h.dtype.itemsize         # h tiles
           + 2 * tb * _round_up(3 * D, 128) * h.dtype.itemsize     # out tiles
           + tb * _round_up(3 * D, 128) * 4)                       # accumulator
    limit = _vmem_limit(est, vmem_cap)

    flat = pl.pallas_call(
        _triplet_gather_kernel,
        out_shape=jax.ShapeDtypeStruct((A, 3 * D), h.dtype),
        grid_spec=pltpu.PrefetchScalarGridSpec(
            num_scalar_prefetch=0,
            grid=(pl.cdiv(A, tb), pl.cdiv(N, tc)),
            in_specs=[
                pl.BlockSpec((tb, 3), lambda i, k: (i, 0)),        # index block
                pl.BlockSpec((tc, D), lambda i, k: (k, 0)),        # row tile of h
            ],
            out_specs=pl.BlockSpec((tb, 3 * D), lambda i, k: (i, 0)),
            scratch_shapes=[pltpu.VMEM((tb, 3 * D), jnp.float32)],
        ),
        compiler_params=pltpu.CompilerParams(
            dimension_semantics=("parallel", "arbitrary"),
            vmem_limit_bytes=limit,
        ),
    )(idx, h)
    return flat.reshape(A, 3, D)


# --------------------------------------------------------------------------- #
# Host-side sampling loop (mirrors Triplet_Sampling.forward, dst_tp='l2',      #
# smp_mthd='rnd_anch').                                                        #
# --------------------------------------------------------------------------- #
def triplet_sampling_forward(batch_hd, batch_tgt, margin, *, smp_mthd="rnd_anch",
                             seed=0, cross_dtype=None):
    # Hot path: distance matrix computed on TPU by the Pallas kernel.
    dst_mat = np.asarray(jax.device_get(pairwise_l2_dist(batch_hd, cross_dtype=cross_dtype)))
    tgt = np.asarray(batch_tgt)
    N = int(tgt.shape[0])

    # TODO(synk): original uses the global `random.randint` (nondeterministic);
    # a seeded RNG is used here so the script is deterministic.
    rng = random.Random(seed)

    genu_list = [i for i in range(N) if tgt[i] == 0]
    spoof_list = [i for i in range(N) if tgt[i] != 0]
    if smp_mthd == "rnd_anch":
        anch_list = list(range(N))
        assert len(genu_list) > 1 and len(spoof_list) > 1, "not enough samples to form triplet tuples."
    else:
        anch_list = genu_list
        assert len(genu_list) > 1 and len(spoof_list) > 0, "not enough samples to form triplet tuples."

    pos_list, neg_list = [], []
    for i in range(len(anch_list)):
        index = anch_list[i]
        if tgt[index] == 0:
            pos_pool, neg_pool = genu_list, spoof_list
        else:
            pos_pool, neg_pool = spoof_list, genu_list
        # NOTE: pool-local random indices are used directly as global row indices
        # (and compared to the global anchor index) -- this reproduces the quirk
        # of the original PyTorch module on purpose.
        pos_idx = rng.randint(0, len(pos_pool) - 1)
        while pos_idx == index:
            pos_idx = rng.randint(0, len(pos_pool) - 1)
        dst_pos = dst_mat[index][pos_idx]
        count = 0
        mindst = float("inf")
        min_neg_idx = -1
        while count < 150:
            neg_idx = rng.randint(0, len(neg_pool) - 1)
            dst_neg = dst_mat[index][neg_idx]
            if dst_pos < dst_neg and dst_pos - dst_neg + margin > 0:
                min_neg_idx = neg_idx
                break
            elif dst_neg < mindst:
                mindst = dst_neg
                min_neg_idx = neg_idx
            count += 1
        pos_list.append(pos_idx)
        neg_list.append(min_neg_idx)

    idx = jnp.asarray(
        np.stack([np.asarray(anch_list), np.asarray(pos_list), np.asarray(neg_list)],
                 axis=1).astype(np.int32))                      # (A, 3)
    return triplet_gather(batch_hd, idx)                        # (A, 3, D)


if __name__ == "__main__":
    margin = 0.5

    # ---- small demo (matches the module's expected usage) -------------------
    key = jax.random.PRNGKey(0)
    k1, k2 = jax.random.split(key)
    N, D = 8, 32
    batch_hd = jax.random.normal(k1, (N, D), dtype=jnp.float32)
    batch_tgt = jnp.array([0, 1, 0, 1, 0, 1, 0, 1], dtype=jnp.int32)

    out = jax.block_until_ready(triplet_sampling_forward(batch_hd, batch_tgt, margin))
    assert out.shape == (N, 3, D) and out.dtype == batch_hd.dtype

    ref_dst = (jnp.sum(batch_hd * batch_hd, -1)[:, None]
               - 2.0 * (batch_hd @ batch_hd.T)
               + jnp.sum(batch_hd * batch_hd, -1)[None, :])
    dst_k = jax.block_until_ready(pairwise_l2_dist(batch_hd))
    assert jnp.allclose(dst_k, ref_dst, atol=1e-3), "dst_mat mismatch vs reference (small)"

    ar = jnp.arange(N)
    idx_test = jnp.stack([ar, (ar + 3) % N, (ar + 5) % N], axis=1).astype(jnp.int32)
    gat_k = jax.block_until_ready(triplet_gather(batch_hd, idx_test))
    gat_ref = jnp.stack([batch_hd[idx_test[:, 0]], batch_hd[idx_test[:, 1]],
                         batch_hd[idx_test[:, 2]]], axis=1)
    assert jnp.allclose(gat_k, gat_ref, atol=1e-5, rtol=1e-5), "gather mismatch (small)"

    # ---- larger shapes: exercise K-tiling (D=640 -> tk=128, 5 steps) and the
    # ---- blocked gather with a tail anchor block -----------------------------
    N2, D2 = 160, 640
    h2 = jax.random.normal(k2, (N2, D2), dtype=jnp.float32)
    tgt2 = (jnp.arange(N2) % 2).astype(jnp.int32)

    out2 = jax.block_until_ready(triplet_sampling_forward(h2, tgt2, margin, seed=1))
    assert out2.shape == (N2, 3, D2)

    ref_dst2 = (jnp.sum(h2 * h2, -1)[:, None] - 2.0 * (h2 @ h2.T)
                + jnp.sum(h2 * h2, -1)[None, :])
    dst_k2 = jax.block_until_ready(pairwise_l2_dist(h2))
    assert jnp.allclose(dst_k2, ref_dst2, atol=5e-2, rtol=1e-3), "dst_mat mismatch (large)"

    ar2 = jnp.arange(N2)
    idx2 = jnp.stack([ar2, (ar2 * 7 + 3) % N2, (ar2 * 11 + 5) % N2], axis=1).astype(jnp.int32)
    gat_k2 = jax.block_until_ready(triplet_gather(h2, idx2))
    gat_ref2 = jnp.stack([h2[idx2[:, 0]], h2[idx2[:, 1]], h2[idx2[:, 2]]], axis=1)
    assert jnp.allclose(gat_k2, gat_ref2, atol=1e-5, rtol=1e-5), "gather mismatch (large)"

    print("KERNEL_OK")
</pallas_src>

<mosaic_0001>
module attributes {stable_mosaic.version = 11 : i64} {
  func.func @_l2_dist_kernel(%arg0: i32, %arg1: i32, %arg2: i32, %arg3: memref<8x32xf32, #tpu.memory_space<vmem>>, %arg4: memref<8x32xf32, #tpu.memory_space<vmem>>, %arg5: memref<8x1xf32, #tpu.memory_space<vmem>>, %arg6: memref<1x8xf32, #tpu.memory_space<vmem>>, %arg7: memref<8x8xf32, #tpu.memory_space<vmem>>, %arg8: memref<8x8xf32, #tpu.memory_space<vmem>>) attributes {dimension_semantics = [#tpu.dimension_semantics<parallel>, #tpu.dimension_semantics<parallel>, #tpu.dimension_semantics<arbitrary>], iteration_bounds = array<i64: 1, 1, 1>, scalar_prefetch = 0 : i64, scratch_operands = 1 : i64, tpu.core_type = #tpu.core_type<tc>, window_params = [{transform_indices = @transform_0, window_bounds = array<i64: 8, 32>}, {transform_indices = @transform_1, window_bounds = array<i64: 8, 32>}, {transform_indices = @transform_2, window_bounds = array<i64: 8, 1>}, {transform_indices = @transform_3, window_bounds = array<i64: 1, 8>}, {transform_indices = @transform_4, window_bounds = array<i64: 8, 8>}]} {
    %c0_i32 = arith.constant 0 : i32
    %0 = arith.cmpi eq, %arg2, %c0_i32 : i32
    %1 = arith.extui %0 : i1 to i32
    %c0_i32_0 = arith.constant 0 : i32
    %2 = arith.cmpi ne, %1, %c0_i32_0 : i32
    scf.if %2 {
      %cst_10 = arith.constant 0.000000e+00 : f32
      %12 = vector.broadcast %cst_10 : f32 to vector<8x8xf32>
      %c0_11 = arith.constant 0 : index
      %c0_12 = arith.constant 0 : index
      %13 = vector.load %arg8[%c0_11, %c0_12] : memref<8x8xf32, #tpu.memory_space<vmem>>, vector<8x8xf32>
      tpu.vector_store %arg8[%c0_11, %c0_12], %12 {strides = array<i32>} : memref<8x8xf32, #tpu.memory_space<vmem>>, vector<8x8xf32>,
    } else {
    }
    %c0 = arith.constant 0 : index
    %c0_1 = arith.constant 0 : index
    %3 = vector.load %arg8[%c0, %c0_1] : memref<8x8xf32, #tpu.memory_space<vmem>>, vector<8x8xf32>
    %c0_2 = arith.constant 0 : index
    %c0_3 = arith.constant 0 : index
    %4 = vector.load %arg3[%c0_2, %c0_3] : memref<8x32xf32, #tpu.memory_space<vmem>>, vector<8x32xf32>
    %c0_4 = arith.constant 0 : index
    %c0_5 = arith.constant 0 : index
    %5 = vector.load %arg4[%c0_4, %c0_5] : memref<8x32xf32, #tpu.memory_space<vmem>>, vector<8x32xf32>
    %cst = arith.constant dense<0.000000e+00> : vector<8x8xf32>
    %6 = tpu.matmul %4, %5, %cst {dimension_numbers = #tpu.dot_dimension_numbers<[1], [1], [0], [0], [0, 0, 1, 0], [], []>} : vector<8x32xf32>, vector<8x32xf32>, vector<8x8xf32> -> vector<8x8xf32>
    %7 = arith.addf %3, %6 : vector<8x8xf32>
    %c0_6 = arith.constant 0 : index
    %c0_7 = arith.constant 0 : index
    %8 = vector.load %arg8[%c0_6, %c0_7] : memref<8x8xf32, #tpu.memory_space<vmem>>, vector<8x8xf32>
    tpu.vector_store %arg8[%c0_6, %c0_7], %7 {strides = array<i32>} : memref<8x8xf32, #tpu.memory_space<vmem>>, vector<8x8xf32>,
    %c0_i32_8 = arith.constant 0 : i32
    %9 = arith.cmpi eq, %arg2, %c0_i32_8 : i32
    %10 = arith.extui %9 : i1 to i32
    %c0_i32_9 = arith.constant 0 : i32
    %11 = arith.cmpi ne, %10, %c0_i32_9 : i32
    scf.if %11 {
      %c0_10 = arith.constant 0 : index
      %c0_11 = arith.constant 0 : index
      %12 = vector.load %arg5[%c0_10, %c0_11] : memref<8x1xf32, #tpu.memory_space<vmem>>, vector<8x1xf32>
      %c0_12 = arith.constant 0 : index
      %c0_13 = arith.constant 0 : index
      %13 = vector.load %arg8[%c0_12, %c0_13] : memref<8x8xf32, #tpu.memory_space<vmem>>, vector<8x8xf32>
      %cst_14 = arith.constant 2.000000e+00 : f32
      %14 = vector.broadcast %cst_14 : f32 to vector<8x8xf32>
      %15 = arith.mulf %14, %13 : vector<8x8xf32>
      %16 = vector.broadcast %12 : vector<8x1xf32> to vector<8x8xf32>
      %17 = arith.subf %16, %15 : vector<8x8xf32>
      %c0_15 = arith.constant 0 : index
      %c0_16 = arith.constant 0 : index
      %18 = vector.load %arg6[%c0_15, %c0_16] : memref<1x8xf32, #tpu.memory_space<vmem>>, vector<1x8xf32>
      %19 = vector.broadcast %18 : vector<1x8xf32> to vector<8x8xf32>
      %20 = arith.addf %17, %19 : vector<8x8xf32>
      %c0_17 = arith.constant 0 : index
      %c0_18 = arith.constant 0 : index
      %21 = vector.load %arg7[%c0_17, %c0_18] : memref<8x8xf32, #tpu.memory_space<vmem>>, vector<8x8xf32>
      tpu.vector_store %arg7[%c0_17, %c0_18], %20 {strides = array<i32>} : memref<8x8xf32, #tpu.memory_space<vmem>>, vector<8x8xf32>,
    } else {
    }
    return
  }
  func.func @transform_0(%arg0: i32, %arg1: i32, %arg2: i32) -> (i32, i32) {
    %c0_i32 = arith.constant 0 : i32
    return %arg0, %arg2 : i32, i32
  }
  func.func @transform_1(%arg0: i32, %arg1: i32, %arg2: i32) -> (i32, i32) {
    %c0_i32 = arith.constant 0 : i32
    return %arg1, %arg2 : i32, i32
  }
  func.func @transform_2(%arg0: i32, %arg1: i32, %arg2: i32) -> (i32, i32) {
    %c0_i32 = arith.constant 0 : i32
    %c0_i32_0 = arith.constant 0 : i32
    return %arg0, %c0_i32 : i32, i32
  }
  func.func @transform_3(%arg0: i32, %arg1: i32, %arg2: i32) -> (i32, i32) {
    %c0_i32 = arith.constant 0 : i32
    %c0_i32_0 = arith.constant 0 : i32
    return %c0_i32, %arg1 : i32, i32
  }
  func.func @transform_4(%arg0: i32, %arg1: i32, %arg2: i32) -> (i32, i32) {
    %c0_i32 = arith.constant 0 : i32
    return %arg0, %arg1 : i32, i32
  }
}

</mosaic_0001>

<bundles_post_ra>
// kernel: tpu_custom_call.1
= control target key start
LH: loop header
LB: loop body
LE: loop exit
PB: predicated region body
PF: predicated region fallthrough
CT: control target
= control target key end

     0   :  { %9 = vsyncpa [#allocation4], 0  ;;  %s263_s0 = inlined_call_operand.vmem [shape: f32[8,32], index: 0, kind: input, shape index: {}]   ;;  %s264_s1 = inlined_call_operand.hbm [shape: f32[8,32], index: 1, kind: input, shape index: {}]   ;;  %s265_s2 = inlined_call_operand.vmem [shape: f32[8,1], index: 2, kind: input, shape index: {}]   ;;  %s266_s3 = inlined_call_operand.vmem [shape: f32[1,8], index: 3, kind: input, shape index: {}]   ;;  %s267_s4 = inlined_call_operand.hbm [shape: f32[8,8], index: 4, kind: output, shape index: {}]  }
   0x1   :  { %10 = vsyncpa [#allocation5], 0  ;;  %s215_s15 = smov [#allocation3]  }
   0x2   :  { %s19_s16 = sshll.u32 %s215_s15, 4  ;;  %s20_s16 = int_to_ptr.vmem [resolvable:$true] %s19_s16 }
   0x3   :  { %s179_s17 = scalar_lea.vmem %s20_s16, 128  ;;  %p184_p1 = scmp.lt.s32.totalorder %s20_s16, %s20_s16 }
   0x4   :  { %p180_p0 = scmp.ne.s32.totalorder %s20_s16, %s179_s17  ;;  %p185_p2 = scmp.lt.s32.totalorder %s179_s17, %s179_s17 }
   0x6   :  { %p186_p3 = por %p185_p2, %p184_p1 }
   0x8   :  { %p187_p4 = pnand %p186_p3, %p180_p0 }
   0xa   :  { %190 = shalt.err (!%p187_p4)
}
   0xb   :  { %22 = dma.hbm_to_vmem [thread:$0]  %s264_s1, 128, %s20_s16, [#allocation4]  }
   0xc   :  { %211 = dma.done.wait [#allocation4], 128  }
   0xd   :  { %212 = vsyncadd [#allocation4], 4294967168  ;;  %vm34_vm0 = vcmask 64512   ;;  %v216_v0 = vmov 0.0   ;;  %vm217_vm1 = vmmov 0   ;;  %v218_v1 = vmov 0  }
   0xe   :  { %35 = vst.msk [vmem:[#allocation2] sm:$0xff] %vm34_vm0, %v216_v0  ;;  %160 = vmatprep.subr.mxu0 %v216_v0  ;;  %162 = vmatprep.mubr.msk.f32.mxu0 %vm217_vm1, %v216_v0  ;;  %vm39_vm2 = vcmask 261120   ;;  %v38_v2 = vld [vmem:[#allocation3] sm:$0xff]  ;;  %v122_v3 = vld [vmem:[%s265_s2] sm:$0xff]  ;;  %s219_s2 = smov [#allocation6]  }
   0xf   :  { %170 = vset.pattern.permute.xlu0 %v218_v1  ;;  %161 = vmatpush3.xpose.msk.msra.mxu0 %vm39_vm2, %v38_v2  ;;  %v37_v4 = vld [vmem:[%s263_s0] sm:$0xff]  ;;  %s146_s25 = sshll.u32 %s219_s2, 4  ;;  %s147_s25 = int_to_ptr.vmem [resolvable:$true] %s146_s25 }
  0x10   :  { %127 = vperm.xlu0 %170, %v122_v3   ;;  %v157_v12 = vld [vmem:[%s266_s3] ss:$0 sm:$0xff]  ;;  %s191_s0 = scalar_lea.vmem %s147_s25, 128  ;;  %p196_p6 = scmp.lt.s32.totalorder %s147_s25, %s147_s25 }
  0x11   :  { %p192_p5 = scmp.ne.s32.totalorder %s147_s25, %s191_s0  ;;  %p197_p7 = scmp.lt.s32.totalorder %s191_s0, %s191_s0 }
  0x12   :  { %163 = vmatmul.mubr.msk.f32.vlgmr.msra.gmra.mxu0 %vm39_vm2, %v37_v4 }
  0x13   :  { %p198_p8 = por %p197_p7, %p196_p6 }
  0x15   :  { %v36_v5 = vld [vmem:[#allocation2] sm:$0xff]  ;;  %p199_p9 = pnand %p198_p8, %p192_p5 }
  0x8b   :  { %v128_v9 = vpop.permute.xlu0 %127 }
  0xd2   :  { %v112_v6 = vpop.f32.mrf.mxu0 }
  0xd3   :  { %v116_v7 = vadd.f32 %v112_v6, %v36_v5 }
  0xd4   :  { %v164_v8 = vpop.f32.mrf.mxu0 }
  0xd5   :  { %118 = vst.msk [vmem:[#allocation2] sm:$0xff] %vm34_vm0, %v116_v7 }
  0xdc   :  { %v123_v10 = vld [vmem:[#allocation2] sm:$0xff] }
  0xdd   :  { %v124_v11 = vmul.f32 2.0, %v123_v10 }
  0xdf   :  { %v130_v13 = vsub.f32 %v128_v9, %v124_v11 }
  0xe1   :  { %v138_v14 = vadd.f32 %v157_v12, %v130_v13 }
  0xe3   :  { %139 = vst.msk [vmem:[#allocation6] sm:$0xff] %vm34_vm0, %v138_v14 }
  0xe4   :  { %202 = shalt.err (!%p199_p9)
}
  0xe5   :  { %149 = dma.vmem_to_hbm [thread:$0]  %s147_s25, 128, %s267_s4, [#allocation5]  }
  0xe6   :  { %213 = dma.done.wait [#allocation5], 128  }
  0xe7   :  { %214 = vsyncadd [#allocation5], 4294967168 }
  0xe8   :  { %153 = vsyncpa [#allocation4], 1 }
  0xe9   :  { %154 = vsyncpa [#allocation5], 1 }

</bundles_post_ra>
